<compile_context>
chip_gen: v6e
topology: v6e:2x2x1
jax: 0.10.0
libtpu: 0.0.40
codegen_flags: <defaults>
</compile_context>

<pallas_src>
import functools

import jax
import jax.numpy as jnp
from jax import lax
from jax.experimental import pallas as pl
from jax.experimental.pallas import tpu as pltpu

KH = KW = 3  # Conv2d(10, 16, 3, stride=1, padding=1)


def _make_kernel(H, W):
    """3x3 same-padding conv + bias + o, one image per grid step."""

    def kernel(w_ref, b_ref, row_ref, col_ref, x_ref, o_ref, out_ref):
        # w_ref  : (9, Cout, Cin_p)  per-tap weight matrices (tap = kh*3+kw)
        # b_ref  : (Cout, 1)         bias
        # row_ref: (1, L) int32      row index of each flattened position
        # col_ref: (1, L) int32      col index of each flattened position
        # x_ref  : (1, Cin_p, L)     one image, channels x flattened spatial
        # o_ref  : (1, Cout, L)      the tensor `o`
        # out_ref: (1, Cout, L)      conv(x) + bias + o
        L = x_ref.shape[2]
        x = x_ref[0]                           # (Cin_p, L)
        row = row_ref[...]                     # (1, L)
        col = col_ref[...]                     # (1, L)

        acc = o_ref[0].astype(jnp.float32) + b_ref[...]   # (Cout, L)

        for kh in range(KH):
            for kw in range(KW):
                dh, dw = kh - 1, kw - 1
                # tap[p] = x[p + dh*W + dw]  (circular; wrap only hits masked
                # positions, so it is exact for all in-bounds taps).
                shift = (-(dh * W + dw)) % L
                tap = x if shift == 0 else pltpu.roll(x, shift, axis=1)

                conds = []
                if dh < 0:
                    conds.append(row >= -dh)
                if dh > 0:
                    conds.append(row < H - dh)
                if dw < 0:
                    conds.append(col >= -dw)
                if dw > 0:
                    conds.append(col < W - dw)
                if conds:
                    ok = functools.reduce(jnp.logical_and, conds)   # (1, L)
                    tap = tap * ok.astype(tap.dtype)                # zero OOB

                acc = acc + jnp.dot(w_ref[kh * KW + kw], tap,
                                    preferred_element_type=jnp.float32)

        out_ref[0] = acc.astype(out_ref.dtype)

    return kernel


@jax.jit
def conv2d_add(x_nchw, o_nchw, w_oihw, bias):
    """Equivalent of M1.forward(x, o) = Conv2d(10,16,3,s=1,p=1)(x) + o."""
    N, Cin, H, W = x_nchw.shape
    Cout = w_oihw.shape[0]
    L = H * W
    Cin_p = ((Cin + 7) // 8) * 8      # sublane-align the contraction dim (10->16)

    # Free collapses of NCHW; x only gets a small zero channel-pad (exact:
    # the matching weight columns are zero too).
    x_flat = jnp.pad(x_nchw.reshape(N, Cin, L),
                     ((0, 0), (0, Cin_p - Cin), (0, 0)))
    o_flat = o_nchw.reshape(N, Cout, L)

    # Per-tap (Cout, Cin_p) weight matrices, tap index = kh*3 + kw.
    w_taps = jnp.transpose(w_oihw, (2, 3, 0, 1)).reshape(KH * KW, Cout, Cin)
    w_taps = jnp.pad(w_taps, ((0, 0), (0, 0), (0, Cin_p - Cin)))
    b_col = bias.reshape(Cout, 1)

    # Row / col index of every flattened spatial position (boundary masks).
    row_ids = jnp.broadcast_to(
        jnp.arange(H, dtype=jnp.int32)[:, None], (H, W)).reshape(1, L)
    col_ids = jnp.broadcast_to(
        jnp.arange(W, dtype=jnp.int32)[None, :], (H, W)).reshape(1, L)

    out_flat = pl.pallas_call(
        _make_kernel(H, W),
        out_shape=jax.ShapeDtypeStruct((N, Cout, L), x_nchw.dtype),
        grid=(N,),
        in_specs=[
            pl.BlockSpec((KH * KW, Cout, Cin_p), lambda n: (0, 0, 0)),
            pl.BlockSpec((Cout, 1), lambda n: (0, 0)),
            pl.BlockSpec((1, L), lambda n: (0, 0)),
            pl.BlockSpec((1, L), lambda n: (0, 0)),
            pl.BlockSpec((1, Cin_p, L), lambda n: (n, 0, 0)),
            pl.BlockSpec((1, Cout, L), lambda n: (n, 0, 0)),
        ],
        out_specs=pl.BlockSpec((1, Cout, L), lambda n: (n, 0, 0)),
        compiler_params=pltpu.CompilerParams(
            dimension_semantics=("parallel",)),
    )(w_taps, b_col, row_ids, col_ids, x_flat, o_flat)

    # (N, Cout, H*W) -> NCHW is a free reshape.
    return out_flat.reshape(N, Cout, H, W)


if __name__ == "__main__":
    # Small shapes consistent with the module: Cin=10 -> Cout=16, spatial 16.
    N, Cin, Cout, H, W = 2, 10, 16, 16, 16

    key = jax.random.PRNGKey(0)
    kx, kwt, kb = jax.random.split(key, 3)

    x = jax.random.normal(kx, (N, Cin, H, W), dtype=jnp.float32)
    o = jnp.ones((N, Cout, H, W), dtype=jnp.float32)

    # Deterministic parameter init (PyTorch-like uniform fan-in bound).
    fan_in = Cin * KH * KW
    bound = 1.0 / (fan_in ** 0.5)
    w_oihw = jax.random.uniform(kwt, (Cout, Cin, KH, KW),
                                minval=-bound, maxval=bound,
                                dtype=jnp.float32)
    bias = jax.random.uniform(kb, (Cout,), minval=-bound, maxval=bound,
                              dtype=jnp.float32)

    out = conv2d_add(x, o, w_oihw, bias)
    out = jax.block_until_ready(out)

    # Reference via XLA conv (high precision) for a sanity check.
    ref = lax.conv_general_dilated(
        x, w_oihw, window_strides=(1, 1), padding=((1, 1), (1, 1)),
        dimension_numbers=("NCHW", "OIHW", "NCHW"),
        precision=lax.Precision.HIGHEST,
    ) + bias[None, :, None, None] + o

    assert out.shape == (N, Cout, H, W)
    assert jnp.allclose(out, ref, atol=5e-3, rtol=5e-3), "mismatch vs reference"
    print("KERNEL_OK")
</pallas_src>

<mosaic_0001>
module attributes {stable_mosaic.version = 11 : i64} {
  func.func @kernel(%arg0: i32, %arg1: memref<9x16x16xf32, #tpu.memory_space<vmem>>, %arg2: memref<16x1xf32, #tpu.memory_space<vmem>>, %arg3: memref<1x256xi32, #tpu.memory_space<vmem>>, %arg4: memref<1x256xi32, #tpu.memory_space<vmem>>, %arg5: memref<1x16x256xf32, #tpu.memory_space<vmem>>, %arg6: memref<1x16x256xf32, #tpu.memory_space<vmem>>, %arg7: memref<1x16x256xf32, #tpu.memory_space<vmem>>) attributes {dimension_semantics = [#tpu.dimension_semantics<parallel>], iteration_bounds = array<i64: 2>, scalar_prefetch = 0 : i64, scratch_operands = 0 : i64, tpu.core_type = #tpu.core_type<tc>, window_params = [{pipeline_mode = #tpu.pipeline_mode<synchronous>, transform_indices = @transform_0, window_bounds = array<i64: 9, 16, 16>}, {pipeline_mode = #tpu.pipeline_mode<synchronous>, transform_indices = @transform_1, window_bounds = array<i64: 16, 1>}, {pipeline_mode = #tpu.pipeline_mode<synchronous>, transform_indices = @transform_2, window_bounds = array<i64: 1, 256>}, {pipeline_mode = #tpu.pipeline_mode<synchronous>, transform_indices = @transform_3, window_bounds = array<i64: 1, 256>}, {transform_indices = @transform_4, window_bounds = array<i64: 1, 16, 256>}, {transform_indices = @transform_5, window_bounds = array<i64: 1, 16, 256>}, {transform_indices = @transform_6, window_bounds = array<i64: 1, 16, 256>}]} {
    %c0 = arith.constant 0 : index
    %c0_0 = arith.constant 0 : index
    %c0_1 = arith.constant 0 : index
    %0 = vector.load %arg5[%c0, %c0_0, %c0_1] : memref<1x16x256xf32, #tpu.memory_space<vmem>>, vector<1x16x256xf32>
    %1 = vector.shape_cast %0 : vector<1x16x256xf32> to vector<16x256xf32>
    %c0_2 = arith.constant 0 : index
    %c0_3 = arith.constant 0 : index
    %2 = vector.load %arg3[%c0_2, %c0_3] : memref<1x256xi32, #tpu.memory_space<vmem>>, vector<1x256xi32>
    %c0_4 = arith.constant 0 : index
    %c0_5 = arith.constant 0 : index
    %3 = vector.load %arg4[%c0_4, %c0_5] : memref<1x256xi32, #tpu.memory_space<vmem>>, vector<1x256xi32>
    %c0_6 = arith.constant 0 : index
    %c0_7 = arith.constant 0 : index
    %c0_8 = arith.constant 0 : index
    %4 = vector.load %arg6[%c0_6, %c0_7, %c0_8] : memref<1x16x256xf32, #tpu.memory_space<vmem>>, vector<1x16x256xf32>
    %5 = vector.shape_cast %4 : vector<1x16x256xf32> to vector<16x256xf32>
    %c0_9 = arith.constant 0 : index
    %c0_10 = arith.constant 0 : index
    %6 = vector.load %arg2[%c0_9, %c0_10] : memref<16x1xf32, #tpu.memory_space<vmem>>, vector<16x1xf32>
    %7 = vector.broadcast %6 : vector<16x1xf32> to vector<16x256xf32>
    %8 = arith.addf %5, %7 : vector<16x256xf32>
    %c17_i32 = arith.constant 17 : i32
    %9 = tpu.dynamic_rotate %1 by %c17_i32 dim 1 : vector<16x256xf32>, i32 -> vector<16x256xf32>
    %c1_i32 = arith.constant 1 : i32
    %10 = vector.broadcast %c1_i32 : i32 to vector<1x256xi32>
    %11 = arith.cmpi sge, %2, %10 : vector<1x256xi32>
    %c1_i32_11 = arith.constant 1 : i32
    %12 = vector.broadcast %c1_i32_11 : i32 to vector<1x256xi32>
    %13 = arith.cmpi sge, %3, %12 : vector<1x256xi32>
    %14 = arith.andi %11, %13 : vector<1x256xi1>
    %15 = arith.extui %14 : vector<1x256xi1> to vector<1x256xi32>
    %16 = arith.sitofp %15 : vector<1x256xi32> to vector<1x256xf32>
    %17 = vector.broadcast %16 : vector<1x256xf32> to vector<16x256xf32>
    %18 = arith.mulf %9, %17 : vector<16x256xf32>
    %c0_12 = arith.constant 0 : index
    %c0_13 = arith.constant 0 : index
    %c0_14 = arith.constant 0 : index
    %19 = vector.load %arg1[%c0_12, %c0_13, %c0_14] : memref<9x16x16xf32, #tpu.memory_space<vmem>>, vector<1x16x16xf32>
    %20 = vector.shape_cast %19 : vector<1x16x16xf32> to vector<16x16xf32>
    %cst = arith.constant dense<0.000000e+00> : vector<16x256xf32>
    %21 = tpu.matmul %20, %18, %cst {dimension_numbers = #tpu.dot_dimension_numbers<[1], [0], [0], [1], [0, 0, 1, 1], [], []>} : vector<16x16xf32>, vector<16x256xf32>, vector<16x256xf32> -> vector<16x256xf32>
    %22 = arith.addf %8, %21 : vector<16x256xf32>
    %c16_i32 = arith.constant 16 : i32
    %23 = tpu.dynamic_rotate %1 by %c16_i32 dim 1 : vector<16x256xf32>, i32 -> vector<16x256xf32>
    %c1_i32_15 = arith.constant 1 : i32
    %24 = vector.broadcast %c1_i32_15 : i32 to vector<1x256xi32>
    %25 = arith.cmpi sge, %2, %24 : vector<1x256xi32>
    %26 = arith.extui %25 : vector<1x256xi1> to vector<1x256xi32>
    %27 = arith.sitofp %26 : vector<1x256xi32> to vector<1x256xf32>
    %28 = vector.broadcast %27 : vector<1x256xf32> to vector<16x256xf32>
    %29 = arith.mulf %23, %28 : vector<16x256xf32>
    %c1 = arith.constant 1 : index
    %c0_16 = arith.constant 0 : index
    %c0_17 = arith.constant 0 : index
    %30 = vector.load %arg1[%c1, %c0_16, %c0_17] : memref<9x16x16xf32, #tpu.memory_space<vmem>>, vector<1x16x16xf32>
    %31 = vector.shape_cast %30 : vector<1x16x16xf32> to vector<16x16xf32>
    %cst_18 = arith.constant dense<0.000000e+00> : vector<16x256xf32>
    %32 = tpu.matmul %31, %29, %cst_18 {dimension_numbers = #tpu.dot_dimension_numbers<[1], [0], [0], [1], [0, 0, 1, 1], [], []>} : vector<16x16xf32>, vector<16x256xf32>, vector<16x256xf32> -> vector<16x256xf32>
    %33 = arith.addf %22, %32 : vector<16x256xf32>
    %c15_i32 = arith.constant 15 : i32
    %34 = tpu.dynamic_rotate %1 by %c15_i32 dim 1 : vector<16x256xf32>, i32 -> vector<16x256xf32>
    %c1_i32_19 = arith.constant 1 : i32
    %35 = vector.broadcast %c1_i32_19 : i32 to vector<1x256xi32>
    %36 = arith.cmpi sge, %2, %35 : vector<1x256xi32>
    %c15_i32_20 = arith.constant 15 : i32
    %37 = vector.broadcast %c15_i32_20 : i32 to vector<1x256xi32>
    %38 = arith.cmpi slt, %3, %37 : vector<1x256xi32>
    %39 = arith.andi %36, %38 : vector<1x256xi1>
    %40 = arith.extui %39 : vector<1x256xi1> to vector<1x256xi32>
    %41 = arith.sitofp %40 : vector<1x256xi32> to vector<1x256xf32>
    %42 = vector.broadcast %41 : vector<1x256xf32> to vector<16x256xf32>
    %43 = arith.mulf %34, %42 : vector<16x256xf32>
    %c2 = arith.constant 2 : index
    %c0_21 = arith.constant 0 : index
    %c0_22 = arith.constant 0 : index
    %44 = vector.load %arg1[%c2, %c0_21, %c0_22] : memref<9x16x16xf32, #tpu.memory_space<vmem>>, vector<1x16x16xf32>
    %45 = vector.shape_cast %44 : vector<1x16x16xf32> to vector<16x16xf32>
    %cst_23 = arith.constant dense<0.000000e+00> : vector<16x256xf32>
    %46 = tpu.matmul %45, %43, %cst_23 {dimension_numbers = #tpu.dot_dimension_numbers<[1], [0], [0], [1], [0, 0, 1, 1], [], []>} : vector<16x16xf32>, vector<16x256xf32>, vector<16x256xf32> -> vector<16x256xf32>
    %47 = arith.addf %33, %46 : vector<16x256xf32>
    %c1_i32_24 = arith.constant 1 : i32
    %48 = tpu.dynamic_rotate %1 by %c1_i32_24 dim 1 : vector<16x256xf32>, i32 -> vector<16x256xf32>
    %c1_i32_25 = arith.constant 1 : i32
    %49 = vector.broadcast %c1_i32_25 : i32 to vector<1x256xi32>
    %50 = arith.cmpi sge, %3, %49 : vector<1x256xi32>
    %51 = arith.extui %50 : vector<1x256xi1> to vector<1x256xi32>
    %52 = arith.sitofp %51 : vector<1x256xi32> to vector<1x256xf32>
    %53 = vector.broadcast %52 : vector<1x256xf32> to vector<16x256xf32>
    %54 = arith.mulf %48, %53 : vector<16x256xf32>
    %c3 = arith.constant 3 : index
    %c0_26 = arith.constant 0 : index
    %c0_27 = arith.constant 0 : index
    %55 = vector.load %arg1[%c3, %c0_26, %c0_27] : memref<9x16x16xf32, #tpu.memory_space<vmem>>, vector<1x16x16xf32>
    %56 = vector.shape_cast %55 : vector<1x16x16xf32> to vector<16x16xf32>
    %cst_28 = arith.constant dense<0.000000e+00> : vector<16x256xf32>
    %57 = tpu.matmul %56, %54, %cst_28 {dimension_numbers = #tpu.dot_dimension_numbers<[1], [0], [0], [1], [0, 0, 1, 1], [], []>} : vector<16x16xf32>, vector<16x256xf32>, vector<16x256xf32> -> vector<16x256xf32>
    %58 = arith.addf %47, %57 : vector<16x256xf32>
    %c4 = arith.constant 4 : index
    %c0_29 = arith.constant 0 : index
    %c0_30 = arith.constant 0 : index
    %59 = vector.load %arg1[%c4, %c0_29, %c0_30] : memref<9x16x16xf32, #tpu.memory_space<vmem>>, vector<1x16x16xf32>
    %60 = vector.shape_cast %59 : vector<1x16x16xf32> to vector<16x16xf32>
    %cst_31 = arith.constant dense<0.000000e+00> : vector<16x256xf32>
    %61 = tpu.matmul %60, %1, %cst_31 {dimension_numbers = #tpu.dot_dimension_numbers<[1], [0], [0], [1], [0, 0, 1, 1], [], []>} : vector<16x16xf32>, vector<16x256xf32>, vector<16x256xf32> -> vector<16x256xf32>
    %62 = arith.addf %58, %61 : vector<16x256xf32>
    %c255_i32 = arith.constant 255 : i32
    %63 = tpu.dynamic_rotate %1 by %c255_i32 dim 1 : vector<16x256xf32>, i32 -> vector<16x256xf32>
    %c15_i32_32 = arith.constant 15 : i32
    %64 = vector.broadcast %c15_i32_32 : i32 to vector<1x256xi32>
    %65 = arith.cmpi slt, %3, %64 : vector<1x256xi32>
    %66 = arith.extui %65 : vector<1x256xi1> to vector<1x256xi32>
    %67 = arith.sitofp %66 : vector<1x256xi32> to vector<1x256xf32>
    %68 = vector.broadcast %67 : vector<1x256xf32> to vector<16x256xf32>
    %69 = arith.mulf %63, %68 : vector<16x256xf32>
    %c5 = arith.constant 5 : index
    %c0_33 = arith.constant 0 : index
    %c0_34 = arith.constant 0 : index
    %70 = vector.load %arg1[%c5, %c0_33, %c0_34] : memref<9x16x16xf32, #tpu.memory_space<vmem>>, vector<1x16x16xf32>
    %71 = vector.shape_cast %70 : vector<1x16x16xf32> to vector<16x16xf32>
    %cst_35 = arith.constant dense<0.000000e+00> : vector<16x256xf32>
    %72 = tpu.matmul %71, %69, %cst_35 {dimension_numbers = #tpu.dot_dimension_numbers<[1], [0], [0], [1], [0, 0, 1, 1], [], []>} : vector<16x16xf32>, vector<16x256xf32>, vector<16x256xf32> -> vector<16x256xf32>
    %73 = arith.addf %62, %72 : vector<16x256xf32>
    %c241_i32 = arith.constant 241 : i32
    %74 = tpu.dynamic_rotate %1 by %c241_i32 dim 1 : vector<16x256xf32>, i32 -> vector<16x256xf32>
    %c15_i32_36 = arith.constant 15 : i32
    %75 = vector.broadcast %c15_i32_36 : i32 to vector<1x256xi32>
    %76 = arith.cmpi slt, %2, %75 : vector<1x256xi32>
    %c1_i32_37 = arith.constant 1 : i32
    %77 = vector.broadcast %c1_i32_37 : i32 to vector<1x256xi32>
    %78 = arith.cmpi sge, %3, %77 : vector<1x256xi32>
    %79 = arith.andi %76, %78 : vector<1x256xi1>
    %80 = arith.extui %79 : vector<1x256xi1> to vector<1x256xi32>
    %81 = arith.sitofp %80 : vector<1x256xi32> to vector<1x256xf32>
    %82 = vector.broadcast %81 : vector<1x256xf32> to vector<16x256xf32>
    %83 = arith.mulf %74, %82 : vector<16x256xf32>
    %c6 = arith.constant 6 : index
    %c0_38 = arith.constant 0 : index
    %c0_39 = arith.constant 0 : index
    %84 = vector.load %arg1[%c6, %c0_38, %c0_39] : memref<9x16x16xf32, #tpu.memory_space<vmem>>, vector<1x16x16xf32>
    %85 = vector.shape_cast %84 : vector<1x16x16xf32> to vector<16x16xf32>
    %cst_40 = arith.constant dense<0.000000e+00> : vector<16x256xf32>
    %86 = tpu.matmul %85, %83, %cst_40 {dimension_numbers = #tpu.dot_dimension_numbers<[1], [0], [0], [1], [0, 0, 1, 1], [], []>} : vector<16x16xf32>, vector<16x256xf32>, vector<16x256xf32> -> vector<16x256xf32>
    %87 = arith.addf %73, %86 : vector<16x256xf32>
    %c240_i32 = arith.constant 240 : i32
    %88 = tpu.dynamic_rotate %1 by %c240_i32 dim 1 : vector<16x256xf32>, i32 -> vector<16x256xf32>
    %c15_i32_41 = arith.constant 15 : i32
    %89 = vector.broadcast %c15_i32_41 : i32 to vector<1x256xi32>
    %90 = arith.cmpi slt, %2, %89 : vector<1x256xi32>
    %91 = arith.extui %90 : vector<1x256xi1> to vector<1x256xi32>
    %92 = arith.sitofp %91 : vector<1x256xi32> to vector<1x256xf32>
    %93 = vector.broadcast %92 : vector<1x256xf32> to vector<16x256xf32>
    %94 = arith.mulf %88, %93 : vector<16x256xf32>
    %c7 = arith.constant 7 : index
    %c0_42 = arith.constant 0 : index
    %c0_43 = arith.constant 0 : index
    %95 = vector.load %arg1[%c7, %c0_42, %c0_43] : memref<9x16x16xf32, #tpu.memory_space<vmem>>, vector<1x16x16xf32>
    %96 = vector.shape_cast %95 : vector<1x16x16xf32> to vector<16x16xf32>
    %cst_44 = arith.constant dense<0.000000e+00> : vector<16x256xf32>
    %97 = tpu.matmul %96, %94, %cst_44 {dimension_numbers = #tpu.dot_dimension_numbers<[1], [0], [0], [1], [0, 0, 1, 1], [], []>} : vector<16x16xf32>, vector<16x256xf32>, vector<16x256xf32> -> vector<16x256xf32>
    %98 = arith.addf %87, %97 : vector<16x256xf32>
    %c239_i32 = arith.constant 239 : i32
    %99 = tpu.dynamic_rotate %1 by %c239_i32 dim 1 : vector<16x256xf32>, i32 -> vector<16x256xf32>
    %c15_i32_45 = arith.constant 15 : i32
    %100 = vector.broadcast %c15_i32_45 : i32 to vector<1x256xi32>
    %101 = arith.cmpi slt, %2, %100 : vector<1x256xi32>
    %c15_i32_46 = arith.constant 15 : i32
    %102 = vector.broadcast %c15_i32_46 : i32 to vector<1x256xi32>
    %103 = arith.cmpi slt, %3, %102 : vector<1x256xi32>
    %104 = arith.andi %101, %103 : vector<1x256xi1>
    %105 = arith.extui %104 : vector<1x256xi1> to vector<1x256xi32>
    %106 = arith.sitofp %105 : vector<1x256xi32> to vector<1x256xf32>
    %107 = vector.broadcast %106 : vector<1x256xf32> to vector<16x256xf32>
    %108 = arith.mulf %99, %107 : vector<16x256xf32>
    %c8 = arith.constant 8 : index
    %c0_47 = arith.constant 0 : index
    %c0_48 = arith.constant 0 : index
    %109 = vector.load %arg1[%c8, %c0_47, %c0_48] : memref<9x16x16xf32, #tpu.memory_space<vmem>>, vector<1x16x16xf32>
    %110 = vector.shape_cast %109 : vector<1x16x16xf32> to vector<16x16xf32>
    %cst_49 = arith.constant dense<0.000000e+00> : vector<16x256xf32>
    %111 = tpu.matmul %110, %108, %cst_49 {dimension_numbers = #tpu.dot_dimension_numbers<[1], [0], [0], [1], [0, 0, 1, 1], [], []>} : vector<16x16xf32>, vector<16x256xf32>, vector<16x256xf32> -> vector<16x256xf32>
    %112 = arith.addf %98, %111 : vector<16x256xf32>
    %c0_50 = arith.constant 0 : index
    %c0_51 = arith.constant 0 : index
    %c0_52 = arith.constant 0 : index
    %113 = vector.load %arg7[%c0_50, %c0_51, %c0_52] : memref<1x16x256xf32, #tpu.memory_space<vmem>>, vector<1x16x256xf32>
    %114 = vector.shape_cast %113 : vector<1x16x256xf32> to vector<16x256xf32>
    %115 = vector.shape_cast %112 : vector<16x256xf32> to vector<1x16x256xf32>
    tpu.vector_store %arg7[%c0_50, %c0_51, %c0_52], %115 {strides = array<i32>} : memref<1x16x256xf32, #tpu.memory_space<vmem>>, vector<1x16x256xf32>,
    return
  }
  func.func @transform_0(%arg0: i32) -> (i32, i32, i32) {
    %c0_i32 = arith.constant 0 : i32
    %c0_i32_0 = arith.constant 0 : i32
    %c0_i32_1 = arith.constant 0 : i32
    %c0_i32_2 = arith.constant 0 : i32
    return %c0_i32, %c0_i32_0, %c0_i32_1 : i32, i32, i32
  }
  func.func @transform_1(%arg0: i32) -> (i32, i32) {
    %c0_i32 = arith.constant 0 : i32
    %c0_i32_0 = arith.constant 0 : i32
    %c0_i32_1 = arith.constant 0 : i32
    return %c0_i32, %c0_i32_0 : i32, i32
  }
  func.func @transform_2(%arg0: i32) -> (i32, i32) {
    %c0_i32 = arith.constant 0 : i32
    %c0_i32_0 = arith.constant 0 : i32
    %c0_i32_1 = arith.constant 0 : i32
    return %c0_i32, %c0_i32_0 : i32, i32
  }
  func.func @transform_3(%arg0: i32) -> (i32, i32) {
    %c0_i32 = arith.constant 0 : i32
    %c0_i32_0 = arith.constant 0 : i32
    %c0_i32_1 = arith.constant 0 : i32
    return %c0_i32, %c0_i32_0 : i32, i32
  }
  func.func @transform_4(%arg0: i32) -> (i32, i32, i32) {
    %c0_i32 = arith.constant 0 : i32
    %c0_i32_0 = arith.constant 0 : i32
    %c0_i32_1 = arith.constant 0 : i32
    return %arg0, %c0_i32, %c0_i32_0 : i32, i32, i32
  }
  func.func @transform_5(%arg0: i32) -> (i32, i32, i32) {
    %c0_i32 = arith.constant 0 : i32
    %c0_i32_0 = arith.constant 0 : i32
    %c0_i32_1 = arith.constant 0 : i32
    return %arg0, %c0_i32, %c0_i32_0 : i32, i32, i32
  }
  func.func @transform_6(%arg0: i32) -> (i32, i32, i32) {
    %c0_i32 = arith.constant 0 : i32
    %c0_i32_0 = arith.constant 0 : i32
    %c0_i32_1 = arith.constant 0 : i32
    return %arg0, %c0_i32, %c0_i32_0 : i32, i32, i32
  }
}

</mosaic_0001>

<bundles_post_ra>
// kernel: conv2d_add.1
= control target key start
LH: loop header
LB: loop body
LE: loop exit
PB: predicated region body
PF: predicated region fallthrough
CT: control target
= control target key end

     0   :  { %s1564_s21 = smov 0   ;;  %s1867_s0 = inlined_call_operand.vmem [shape: f32[9,16,16], index: 0, kind: input, shape index: {}]   ;;  %s1868_s1 = inlined_call_operand.vmem [shape: f32[16,1], index: 1, kind: input, shape index: {}]   ;;  %s1869_s2 = inlined_call_operand.vmem [shape: s32[1,256], index: 2, kind: input, shape index: {}]   ;;  %s1870_s3 = inlined_call_operand.vmem [shape: s32[1,256], index: 3, kind: input, shape index: {}]   ;;  %s1871_s4 = inlined_call_operand.vmem [shape: f32[2,16,256], index: 4, kind: input, shape index: {}]   ;;  %s1872_s5 = inlined_call_operand.vmem [shape: f32[2,16,256], index: 5, kind: input, shape index: {}]   ;;  %s1873_s6 = inlined_call_operand.vmem [shape: f32[2,16,256], index: 6, kind: output, shape index: {}]  }
   0x1 LB: > { %s1429_s22 = sadd.s32 4294967295, %s1517_s21   ;;  %p1433_p0 = scmp.ge.s32.totalorder %s1517_s21, 1  ;;  %s1517_s21 = sphi %s1564_s21, %s16_s21  }
   0x2   : > { %p222_p1 = scmp.lt.s32.totalorder %s1517_s21, 3 }
   0x4   : > { %p223_p2 = pnand %p1433_p0, %p222_p1 }
   0x5   : > { %p257_p3 = scmp.lt.s32.totalorder (!%p223_p2), %s1429_s22, 1  ;;  %s1520_s27 = smov (!%p223_p2), 17  }
   0x6   : > { %226 = sbr.rel (%p223_p2) target bundleno = 397 (0x18d), region = 44  ;;  %s1521_s28 = smov (!%p223_p2), 16  }
   0x7   : > { %s1522_s29 = smov (!%p223_p2), 15   ;;  %s1523_s30 = smov (!%p223_p2), 1  }
   0x8   : > { %s1524_s7 = smov (!%p223_p2), 127   ;;  %s1525_s8 = smov (!%p223_p2), 113  }
   0x9   : > { %s1526_s9 = smov (!%p223_p2), 112   ;;  %s1527_s10 = smov (!%p223_p2), 111  }
   0xb   : > { %s1877_s22 = smov (!%p257_p3, %s1429_s22), 1  ;;  %v1519_v0 = vmov 0.0   ;;  %v1528_v5 = vmov 0   ;;  %v283_v6 = vld [vmem:[%s1868_s1 + $0x8] sm:$0xff]  ;;  %v282_v7 = vld [vmem:[%s1868_s1] sm:$0xff]  ;;  %v306_v8 = vlaneseq  ;;  %vm335_vm7 = vcmask 130048  }
   0xc   : > { %412 = vmatprep.mubr.f32.mxu1 %v1519_v0  ;;  %406 = vmatprep.mubr.f32.mxu0 %v1519_v0  ;;  %s1574_s23 = sshll.u32 %s1877_s22, 5  ;;  %v1629_v9 = vld [vmem:[%s1869_s2] sm:$0x3]  ;;  %v334_v38 = vld [vmem:[%s1867_s0 + $0x8] sm:$0xff]  ;;  %v1444_v51 = vld [vmem:[%s1867_s0 + $0x10] sm:$0xff] }
   0xd   : > { %s261_s26 = scalar_lea.vmem %s1871_s4, %s1574_s23  ;;  %1510 = vset.pattern.permute.xlu1 %v1528_v5  ;;  %1509 = vset.pattern.permute.xlu0 %v1528_v5  ;;  %v1634_v10 = vld [vmem:[%s1870_s3] sm:$0x3]  ;;  %vm313_vm0 = vcmp.ge.s32.totalorder %v1629_v9, 1  ;;  %v320_v11 = vshrl.u32 %v306_v8, 7  ;;  %v1642_v12 = vand.u32 127, %v306_v8  ;;  %v1445_v59 = vld [vmem:[%s1867_s0 + $0x18] sm:$0xff]  ;;  %s266_s13 = scalar_lea.vmem %s1872_s5, %s1574_s23 }
   0xe   : > { %v1580_v1 = vld [vmem:[%s261_s26 + $0x10] sm:$0xff]  ;;  %v1582_v2 = vld [vmem:[%s261_s26] sm:$0xff]  ;;  %v1586_v3 = vld [vmem:[%s261_s26 + $0x18] sm:$0xff]  ;;  %vm314_vm1 = vcmp.ge.s32.totalorder %v1634_v10, 1  ;;  %v1443_v20 = vsel %vm313_vm0, 1.0, %v1519_v0  ;;  %vm556_vm5 = vcmp.lt.s32.totalorder %v1634_v10, 15  ;;  %s271_s16 = scalar_lea.vmem %s1873_s6, %s1574_s23 }
   0xf   : > { %300 = vrot.lane.b32.xlu0 %v1580_v1, %s1520_s27  ;;  %298 = vrot.lane.b32.xlu1 %v1582_v2, %s1520_s27  ;;  %v1588_v4 = vld [vmem:[%s261_s26 + $0x8] sm:$0xff]  ;;  %vm315_vm2 = vmand %vm313_vm0, %vm314_vm1  ;;  %v1644_v13 = vsub.s32 0, %v320_v11  ;;  %v1646_v14 = vsub.s32 1, %v320_v11  ;;  %vm308_vm3 = vcmp.lt.s32.totalorder %v1642_v12, 17  ;;  %vm431_vm4 = vcmp.lt.s32.totalorder %v1642_v12, 16  ;;  %v333_v42 = vld [vmem:[%s1867_s0] sm:$0xff] }
  0x10   : > { %v1440_v15 = vsel %vm315_vm2, 1.0, %v1519_v0  ;;  %vm1663_vm6 = vmand %vm313_vm0, %vm556_vm5  ;;  %vm551_vm8 = vcmp.lt.s32.totalorder %v1642_v12, 15  ;;  %v1453_v58 = vsel %vm314_vm1, 1.0, %v1519_v0  ;;  %vm673_vm9 = vcmp.lt.s32.totalorder %v1642_v12, 1  ;;  %v1449_v11 = vld [vmem:[%s1867_s0 + $0x20] sm:$0xff]  ;;  %v1469_v10 = vld [vmem:[%s1867_s0 + $0x68] sm:$0xff] }
  0x11   : > { %v322_v18 = vrot.slane %v1440_v15, %v1644_v13  ;;  %v326_v19 = vrot.slane %v1440_v15, %v1646_v14  ;;  %v442_v26 = vrot.slane %v1443_v20, %v1644_v13  ;;  %v446_v29 = vrot.slane %v1443_v20, %v1646_v14 }
  0x12   : > { %v1448_v41 = vsel %vm1663_vm6, 1.0, %v1519_v0  ;;  %v688_v8 = vrot.slane %v1453_v58, %v1646_v14  ;;  %vm1008_vm10 = vcmp.lt.s32.totalorder %v1629_v9, 15  ;;  %vm883_vm11 = vcmp.lt.s32.totalorder %v1642_v12, 127 }
  0x13   : > { %304 = vrot.lane.b32.xlu0 %v1586_v3, %s1520_s27  ;;  %302 = vrot.lane.b32.xlu1 %v1588_v4, %s1520_s27  ;;  %v564_v47 = vrot.slane %v1448_v41, %v1644_v13  ;;  %v568_v50 = vrot.slane %v1448_v41, %v1646_v14  ;;  %vm1009_vm12 = vmand %vm1008_vm10, %vm314_vm1  ;;  %vm1003_vm13 = vcmp.lt.s32.totalorder %v1642_v12, 113  ;;  %vm1125_vm14 = vcmp.lt.s32.totalorder %v1642_v12, 112 }
  0x14   : > { %vm1250_vm15 = vmand %vm1008_vm10, %vm556_vm5  ;;  %vm1245_vm0 = vcmp.lt.s32.totalorder %v1642_v12, 111  ;;  %v1479_v12 = vld [vmem:[%s1867_s0 + $0x88] sm:$0xff] }
  0x15   : > { %v1477_v9 = vsel %vm1250_vm15, 1.0, %v1519_v0 }
  0x17   : > { %425 = vrot.lane.b32.xlu0 %v1580_v1, %s1521_s28  ;;  %429 = vrot.lane.b32.xlu1 %v1586_v3, %s1521_s28 }
  0x1b   : > { %423 = vrot.lane.b32.xlu0 %v1582_v2, %s1521_s28  ;;  %427 = vrot.lane.b32.xlu1 %v1588_v4, %s1521_s28 }
  0x1f   : > { %545 = vrot.lane.b32.xlu0 %v1580_v1, %s1522_s29  ;;  %549 = vrot.lane.b32.xlu1 %v1586_v3, %s1522_s29 }
  0x23   : > { %543 = vrot.lane.b32.xlu0 %v1582_v2, %s1522_s29  ;;  %547 = vrot.lane.b32.xlu1 %v1588_v4, %s1522_s29 }
  0x27   : > { %667 = vrot.lane.b32.xlu0 %v1580_v1, %s1523_s30  ;;  %671 = vrot.lane.b32.xlu1 %v1586_v3, %s1523_s30 }
  0x2b   : > { %665 = vrot.lane.b32.xlu0 %v1582_v2, %s1523_s30  ;;  %669 = vrot.lane.b32.xlu1 %v1588_v4, %s1523_s30 }
  0x2f   : > { %877 = vrot.lane.b32.xlu0 %v1580_v1, %s1524_s7  ;;  %881 = vrot.lane.b32.xlu1 %v1586_v3, %s1524_s7 }
  0x33   : > { %875 = vrot.lane.b32.xlu0 %v1582_v2, %s1524_s7  ;;  %879 = vrot.lane.b32.xlu1 %v1588_v4, %s1524_s7 }
  0x37   : > { %997 = vrot.lane.b32.xlu0 %v1580_v1, %s1525_s8  ;;  %1001 = vrot.lane.b32.xlu1 %v1586_v3, %s1525_s8 }
  0x3b   : > { %995 = vrot.lane.b32.xlu0 %v1582_v2, %s1525_s8  ;;  %999 = vrot.lane.b32.xlu1 %v1588_v4, %s1525_s8 }
  0x3f   : > { %1119 = vrot.lane.b32.xlu0 %v1580_v1, %s1526_s9  ;;  %1123 = vrot.lane.b32.xlu1 %v1586_v3, %s1526_s9 }
  0x43   : > { %1117 = vrot.lane.b32.xlu0 %v1582_v2, %s1526_s9  ;;  %1121 = vrot.lane.b32.xlu1 %v1588_v4, %s1526_s9 }
  0x47   : > { %1239 = vrot.lane.b32.xlu0 %v1580_v1, %s1527_s10  ;;  %1243 = vrot.lane.b32.xlu1 %v1586_v3, %s1527_s10 }
  0x4b   : > { %1237 = vrot.lane.b32.xlu0 %v1582_v2, %s1527_s10  ;;  %1241 = vrot.lane.b32.xlu1 %v1588_v4, %s1527_s10 }
  0x4f   : > { %291 = vperm.xlu1 %1510, %v283_v6   ;;  %286 = vperm.xlu0 %1509, %v282_v7   ;;  %v684_v7 = vrot.slane %v1453_v58, %v1644_v13 }
  0x81   : > { %v301_v16 = vpop.permute.xlu0 %300  ;;  %v299_v17 = vpop.permute.xlu1 %298 }
  0x85   : > { %v305_v21 = vpop.permute.xlu0 %304  ;;  %v303_v22 = vpop.permute.xlu1 %302 }
  0x86   : > { %v310_v23 = vsel %vm308_vm3, %v301_v16, %v305_v21  ;;  %v312_v24 = vsel %vm308_vm3, %v305_v21, %v301_v16  ;;  %v309_v25 = vsel %vm308_vm3, %v299_v17, %v303_v22  ;;  %v311_v27 = vsel %vm308_vm3, %v303_v22, %v299_v17  ;;  %v1450_v22 = vld [vmem:[%s1867_s0 + $0x28] sm:$0xff] }
  0x87   : > { %v332_v28 = vmul.f32 %v326_v19, %v310_v23  ;;  %v331_v30 = vmul.f32 %v322_v18, %v312_v24  ;;  %v330_v32 = vmul.f32 %v326_v19, %v309_v25  ;;  %v329_v35 = vmul.f32 %v322_v18, %v311_v27 }
  0x88   : > { %v1462_v21 = vsel %vm556_vm5, 1.0, %v1519_v0 }
  0x89   : > { %370 = vmatprep.subr.mxu0 %v332_v28  ;;  %1487 = vmatprep.subr.mxu1 %v332_v28  ;;  %v426_v33 = vpop.permute.xlu0 %425  ;;  %v430_v34 = vpop.permute.xlu1 %429  ;;  %v894_v27 = vrot.slane %v1462_v21, %v1644_v13  ;;  %v898_v28 = vrot.slane %v1462_v21, %v1646_v14 }
  0x8a   : > { %v433_v36 = vsel %vm431_vm4, %v426_v33, %v430_v34  ;;  %v435_v37 = vsel %vm431_vm4, %v430_v34, %v426_v33  ;;  %371 = vmatpush1.msra.mxu0 %v331_v30  ;;  %1489 = vmatpush1.msra.mxu1 %v331_v30 }
  0x8b   : > { %v451_v39 = vmul.f32 %v442_v26, %v435_v37  ;;  %v452_v40 = vmul.f32 %v446_v29, %v433_v36  ;;  %372 = vmatprep.subr.mxu0 %v330_v32  ;;  %1488 = vmatprep.subr.mxu1 %v330_v32  ;;  %v1455_v36 = vld [vmem:[%s1867_s0 + $0x38] sm:$0xff]  ;;  %v1459_v37 = vld [vmem:[%s1867_s0 + $0x48] sm:$0xff] }
  0x8c   : > { %373 = vmatpush1.msra.mxu0 %v329_v35  ;;  %1490 = vmatpush1.msra.mxu1 %v329_v35  ;;  %v1467_v35 = vsel %vm1009_vm12, 1.0, %v1519_v0 }
  0x8d   : > { %v424_v43 = vpop.permute.xlu0 %423  ;;  %490 = vmatprep.subr.mxu1 %v452_v40  ;;  %v428_v44 = vpop.permute.xlu1 %427  ;;  %1442 = vmatmul.mubr.msk.f32.vlgmr.msra.gmra.mxu1 %vm335_vm7, %v334_v38 }
  0x8e   : > { %v432_v45 = vsel %vm431_vm4, %v424_v43, %v428_v44  ;;  %v434_v46 = vsel %vm431_vm4, %v428_v44, %v424_v43  ;;  %491 = vmatpush1.msra.mxu1 %v451_v39  ;;  %1441 = vmatmul.mubr.msk.f32.vlgmr.msra.gmra.mxu0 %vm335_vm7, %v333_v42  ;;  %v1016_v42 = vrot.slane %v1467_v35, %v1644_v13 }
  0x8f   : > { %v449_v48 = vmul.f32 %v442_v26, %v434_v46  ;;  %v450_v49 = vmul.f32 %v446_v29, %v432_v45  ;;  %526 = vmatprep.mubr.f32.mxu1 %v1519_v0  ;;  %648 = vmatprep.mubr.f32.mxu0 %v1519_v0  ;;  %v1020_v45 = vrot.slane %v1467_v35, %v1646_v14  ;;  %v1463_v46 = vld [vmem:[%s1867_s0 + $0x50] sm:$0xff] }
  0x91   : > { %v546_v52 = vpop.permute.xlu0 %545  ;;  %492 = vmatprep.subr.mxu1 %v450_v49  ;;  %v550_v53 = vpop.permute.xlu1 %549 }
  0x92   : > { %v553_v54 = vsel %vm551_vm8, %v546_v52, %v550_v53  ;;  %v555_v55 = vsel %vm551_vm8, %v550_v53, %v546_v52  ;;  %493 = vmatpush1.msra.mxu1 %v449_v48  ;;  %v1464_v53 = vld [vmem:[%s1867_s0 + $0x58] sm:$0xff] }
  0x93   : > { %v573_v56 = vmul.f32 %v564_v47, %v555_v55  ;;  %v574_v57 = vmul.f32 %v568_v50, %v553_v54  ;;  %1446 = vmatmul.mubr.msk.f32.vlgmr.msra.gmra.mxu1 %vm335_vm7, %v1444_v51  ;;  %v1472_v54 = vsel %vm1008_vm10, 1.0, %v1519_v0 }
  0x94   : > { %532 = vmatprep.mubr.f32.mxu1 %v1519_v0 }
  0x95   : > { %v544_v60 = vpop.permute.xlu0 %543  ;;  %612 = vmatprep.subr.mxu0 %v574_v57  ;;  %v548_v61 = vpop.permute.xlu1 %547 }
  0x96   : > { %v552_v62 = vsel %vm551_vm8, %v544_v60, %v548_v61  ;;  %v554_v63 = vsel %vm551_vm8, %v548_v61, %v544_v60  ;;  %613 = vmatpush1.msra.mxu0 %v573_v56  ;;  %v1136_v61 = vrot.slane %v1472_v54, %v1644_v13 }
  0x97   : > { %v571_v5 = vmul.f32 %v564_v47, %v554_v63  ;;  %v572_v6 = vmul.f32 %v568_v50, %v552_v62  ;;  %1447 = vmatmul.mubr.msk.f32.gmra.mxu1 %vm335_vm7, %v1445_v59  ;;  %v1140_v62 = vrot.slane %v1472_v54, %v1646_v14  ;;  %v1468_v63 = vld [vmem:[%s1867_s0 + $0x60] sm:$0xff] }
  0x98   : > { %768 = vmatprep.mubr.f32.mxu1 %v1519_v0 }
  0x99   : > { %v668_v15 = vpop.permute.xlu0 %667  ;;  %614 = vmatprep.subr.mxu0 %v572_v6  ;;  %v672_v16 = vpop.permute.xlu1 %671 }
  0x9a   : > { %v675_v17 = vsel %vm673_vm9, %v668_v15, %v672_v16  ;;  %v677_v18 = vsel %vm673_vm9, %v672_v16, %v668_v15  ;;  %615 = vmatpush1.msra.mxu0 %v571_v5 }
  0x9b   : > { %v693_v19 = vmul.f32 %v684_v7, %v677_v18  ;;  %v694_v20 = vmul.f32 %v688_v8, %v675_v17  ;;  %1451 = vmatmul.mubr.msk.f32.vlgmr.msra.gmra.mxu0 %vm335_vm7, %v1449_v11  ;;  %822 = vmatprep.subr.mxu0 %v1586_v3 }
  0x9c   : > { %654 = vmatprep.mubr.f32.mxu0 %v1519_v0  ;;  %823 = vmatpush1.msra.mxu0 %v1580_v1 }
  0x9d   : > { %v666_v23 = vpop.permute.xlu0 %665  ;;  %732 = vmatprep.subr.mxu1 %v694_v20  ;;  %v670_v24 = vpop.permute.xlu1 %669  ;;  %824 = vmatprep.subr.mxu0 %v1588_v4  ;;  %v1454_v4 = vld [vmem:[%s1867_s0 + $0x30] sm:$0xff] }
  0x9e   : > { %v674_v3 = vsel %vm673_vm9, %v666_v23, %v670_v24  ;;  %v676_v25 = vsel %vm673_vm9, %v670_v24, %v666_v23  ;;  %733 = vmatpush1.msra.mxu1 %v693_v19  ;;  %825 = vmatpush1.msra.mxu0 %v1582_v2  ;;  %v1458_v2 = vld [vmem:[%s1867_s0 + $0x40] sm:$0xff]  ;;  %v1261_v23 = vrot.slane %v1477_v9, %v1646_v14  ;;  %v1473_v24 = vld [vmem:[%s1867_s0 + $0x70] sm:$0xff]  ;;  %v1474_v14 = vld [vmem:[%s1867_s0 + $0x78] sm:$0xff] }
  0x9f   : > { %v691_v26 = vmul.f32 %v684_v7, %v676_v25  ;;  %v692_v1 = vmul.f32 %v688_v8, %v674_v3  ;;  %1452 = vmatmul.mubr.msk.f32.gmra.mxu0 %vm335_vm7, %v1450_v22  ;;  %v1257_v22 = vrot.slane %v1477_v9, %v1644_v13 }
  0xa0   : > { %858 = vmatprep.mubr.f32.mxu0 %v1519_v0 }
  0xa1   : > { %v878_v29 = vpop.permute.xlu0 %877  ;;  %734 = vmatprep.subr.mxu1 %v692_v1  ;;  %v882_v30 = vpop.permute.xlu1 %881 }
  0xa2   : > { %v885_v31 = vsel %vm883_vm11, %v878_v29, %v882_v30  ;;  %v887_v32 = vsel %vm883_vm11, %v882_v30, %v878_v29  ;;  %735 = vmatpush1.msra.mxu1 %v691_v26 }
  0xa3   : > { %v903_v33 = vmul.f32 %v894_v27, %v885_v31  ;;  %v904_v34 = vmul.f32 %v898_v28, %v887_v32  ;;  %1456 = vmatmul.mubr.msk.f32.vlgmr.msra.gmra.mxu1 %vm335_vm7, %v1454_v4  ;;  %1460 = vmatmul.mubr.msk.f32.vlgmr.msra.gmra.mxu0 %vm335_vm7, %v1458_v2  ;;  %v1478_v32 = vld [vmem:[%s1867_s0 + $0x80] sm:$0xff] }
  0xa4   : > { %774 = vmatprep.mubr.f32.mxu1 %v1519_v0  ;;  %864 = vmatprep.mubr.f32.mxu0 %v1519_v0 }
  0xa5   : > { %v876_v38 = vpop.permute.xlu0 %875  ;;  %942 = vmatprep.subr.mxu1 %v904_v34  ;;  %v880_v39 = vpop.permute.xlu1 %879 }
  0xa6   : > { %v884_v40 = vsel %vm883_vm11, %v876_v38, %v880_v39  ;;  %v886_v41 = vsel %vm883_vm11, %v880_v39, %v876_v38  ;;  %943 = vmatpush1.msra.mxu1 %v903_v33 }
  0xa7   : > { %v901_v43 = vmul.f32 %v894_v27, %v884_v40  ;;  %v902_v44 = vmul.f32 %v898_v28, %v886_v41  ;;  %1457 = vmatmul.mubr.msk.f32.gmra.mxu1 %vm335_vm7, %v1455_v36  ;;  %1461 = vmatmul.mubr.msk.f32.gmra.mxu0 %vm335_vm7, %v1459_v37 }
  0xa8   : > { %978 = vmatprep.mubr.f32.mxu1 %v1519_v0  ;;  %1100 = vmatprep.mubr.f32.mxu0 %v1519_v0 }
  0xa9   : > { %v998_v47 = vpop.permute.xlu0 %997  ;;  %944 = vmatprep.subr.mxu1 %v902_v44  ;;  %v1002_v48 = vpop.permute.xlu1 %1001 }
  0xaa   : > { %v1005_v49 = vsel %vm1003_vm13, %v998_v47, %v1002_v48  ;;  %v1007_v50 = vsel %vm1003_vm13, %v1002_v48, %v998_v47  ;;  %945 = vmatpush1.msra.mxu1 %v901_v43 }
  0xab   : > { %v1025_v51 = vmul.f32 %v1016_v42, %v1005_v49  ;;  %v1026_v52 = vmul.f32 %v1020_v45, %v1007_v50  ;;  %1465 = vmatmul.mubr.msk.f32.vlgmr.msra.gmra.mxu1 %vm335_vm7, %v1463_v46  ;;  %v279_v49 = vld [vmem:[%s266_s13 + $0x8] sm:$0xff] }
  0xac   : > { %984 = vmatprep.mubr.f32.mxu1 %v1519_v0 }
  0xad   : > { %v996_v55 = vpop.permute.xlu0 %995  ;;  %1064 = vmatprep.subr.mxu0 %v1026_v52  ;;  %v1000_v56 = vpop.permute.xlu1 %999 }
  0xae   : > { %v1004_v57 = vsel %vm1003_vm13, %v996_v55, %v1000_v56  ;;  %v1006_v58 = vsel %vm1003_vm13, %v1000_v56, %v996_v55  ;;  %1065 = vmatpush1.msra.mxu0 %v1025_v51  ;;  %v280_v51 = vld [vmem:[%s266_s13 + $0x10] sm:$0xff] }
  0xaf   : > { %v1023_v59 = vmul.f32 %v1016_v42, %v1004_v57  ;;  %v1024_v60 = vmul.f32 %v1020_v45, %v1006_v58  ;;  %1466 = vmatmul.mubr.msk.f32.gmra.mxu1 %vm335_vm7, %v1464_v53  ;;  %v281_v58 = vld [vmem:[%s266_s13 + $0x18] sm:$0xff] }
  0xb0   : > { %1220 = vmatprep.mubr.f32.mxu1 %v1519_v0 }
  0xb1   : > { %v1120_v5 = vpop.permute.xlu0 %1119  ;;  %1066 = vmatprep.subr.mxu0 %v1024_v60  ;;  %v1124_v6 = vpop.permute.xlu1 %1123 }
  0xb2   : > { %v1127_v7 = vsel %vm1125_vm14, %v1120_v5, %v1124_v6  ;;  %v1129_v8 = vsel %vm1125_vm14, %v1124_v6, %v1120_v5  ;;  %1067 = vmatpush1.msra.mxu0 %v1023_v59 }
  0xb3   : > { %v1145_v11 = vmul.f32 %v1136_v61, %v1127_v7  ;;  %v1146_v15 = vmul.f32 %v1140_v62, %v1129_v8  ;;  %1470 = vmatmul.mubr.msk.f32.vlgmr.msra.gmra.mxu0 %vm335_vm7, %v1468_v63 }
  0xb4   : > { %1106 = vmatprep.mubr.f32.mxu0 %v1519_v0 }
  0xb5   : > { %v1118_v16 = vpop.permute.xlu0 %1117  ;;  %1184 = vmatprep.subr.mxu1 %v1146_v15  ;;  %v1122_v17 = vpop.permute.xlu1 %1121 }
  0xb6   : > { %v1126_v18 = vsel %vm1125_vm14, %v1118_v16, %v1122_v17  ;;  %v1128_v19 = vsel %vm1125_vm14, %v1122_v17, %v1118_v16  ;;  %1185 = vmatpush1.msra.mxu1 %v1145_v11 }
  0xb7   : > { %v1143_v20 = vmul.f32 %v1136_v61, %v1126_v18  ;;  %v1144_v21 = vmul.f32 %v1140_v62, %v1128_v19  ;;  %1471 = vmatmul.mubr.msk.f32.gmra.mxu0 %vm335_vm7, %v1469_v10 }
  0xb8   : > { %1341 = vmatprep.mubr.f32.mxu0 %v1519_v0 }
  0xb9   : > { %v1240_v3 = vpop.permute.xlu0 %1239  ;;  %1186 = vmatprep.subr.mxu1 %v1144_v21  ;;  %v1244_v25 = vpop.permute.xlu1 %1243 }
  0xba   : > { %v1247_v26 = vsel %vm1245_vm0, %v1240_v3, %v1244_v25  ;;  %v1249_v1 = vsel %vm1245_vm0, %v1244_v25, %v1240_v3  ;;  %1187 = vmatpush1.msra.mxu1 %v1143_v20 }
  0xbb   : > { %v1266_v27 = vmul.f32 %v1257_v22, %v1247_v26  ;;  %v1267_v13 = vmul.f32 %v1261_v23, %v1249_v1  ;;  %1475 = vmatmul.mubr.msk.f32.vlgmr.msra.gmra.mxu1 %vm335_vm7, %v1473_v24 }
  0xbc   : > { %1226 = vmatprep.mubr.f32.mxu1 %v1519_v0 }
  0xbd   : > { %v1238_v28 = vpop.permute.xlu0 %1237  ;;  %1305 = vmatprep.subr.mxu0 %v1267_v13  ;;  %v1242_v4 = vpop.permute.xlu1 %1241 }
  0xbe   : > { %v1246_v2 = vsel %vm1245_vm0, %v1238_v28, %v1242_v4  ;;  %v1248_v29 = vsel %vm1245_vm0, %v1242_v4, %v1238_v28  ;;  %1306 = vmatpush1.msra.mxu0 %v1266_v27 }
  0xbf   : > { %v1264_v30 = vmul.f32 %v1257_v22, %v1246_v2  ;;  %v1265_v31 = vmul.f32 %v1261_v23, %v1248_v29  ;;  %1476 = vmatmul.mubr.msk.f32.gmra.mxu1 %vm335_vm7, %v1474_v14 }
  0xc1   : > { %1307 = vmatprep.subr.mxu0 %v1265_v31 }
  0xc2   : > { %1308 = vmatpush1.msra.mxu0 %v1264_v30 }
  0xc3   : > { %1480 = vmatmul.mubr.msk.f32.vlgmr.msra.gmra.mxu0 %vm335_vm7, %v1478_v32 }
  0xc4   : > { %1347 = vmatprep.mubr.f32.mxu0 %v1519_v0  ;;  %v278_v0 = vld [vmem:[%s266_s13] sm:$0xff] }
  0xc7   : > { %1481 = vmatmul.mubr.msk.f32.gmra.mxu0 %vm335_vm7, %v1479_v12 }
  0xca   : > { %v287_v44 = vpop.permute.xlu0 %286  ;;  %v292_v50 = vpop.permute.xlu1 %291 }
  0xcb   : > { %v294_v47 = vadd.f32 %v287_v44, %v278_v0  ;;  %v295_v54 = vadd.f32 %v287_v44, %v279_v49  ;;  %v296_v57 = vadd.f32 %v292_v50, %v280_v51  ;;  %v297_v63 = vadd.f32 %v292_v50, %v281_v58 }
 0x14d   : > { %v414_v33 = vpop.f32.mrf.mxu1 }
 0x14e   : > { %v408_v36 = vpop.f32.mrf.mxu0  ;;  %v421_v5 = vadd.f32 %v414_v33, %v296_v57 }
 0x14f   : > { %v416_v34 = vpop.f32.mrf.mxu1  ;;  %v419_v55 = vadd.f32 %v408_v36, %v294_v47 }
 0x150   : > { %v410_v38 = vpop.f32.mrf.mxu0  ;;  %v422_v15 = vadd.f32 %v416_v34, %v297_v63 }
 0x151   : > { %v420_v60 = vadd.f32 %v410_v38, %v295_v54 }
 0x153   : > { %v528_v35 = vpop.f32.mrf.mxu1 }
 0x154   : > { %v539_v61 = vadd.f32 %v528_v35, %v419_v55 }
 0x155   : > { %v530_v37 = vpop.f32.mrf.mxu1 }
 0x156   : > { %v540_v7 = vadd.f32 %v530_v37, %v420_v60 }
 0x157   : > { %v534_v39 = vpop.f32.mrf.mxu1 }
 0x158   : > { %v541_v10 = vadd.f32 %v534_v39, %v421_v5 }
 0x159   : > { %v536_v42 = vpop.f32.mrf.mxu1 }
 0x15a   : > { %v542_v20 = vadd.f32 %v536_v42, %v422_v15 }
 0x15b   : > { %v650_v40 = vpop.f32.mrf.mxu0 }
 0x15c   : > { %v661_v8 = vadd.f32 %v650_v40, %v539_v61 }
 0x15d   : > { %v652_v41 = vpop.f32.mrf.mxu0 }
 0x15e   : > { %v662_v17 = vadd.f32 %v652_v41, %v540_v7 }
 0x15f   : > { %v656_v43 = vpop.f32.mrf.mxu0 }
 0x160   : > { %v663_v21 = vadd.f32 %v656_v43, %v541_v10 }
 0x161   : > { %v658_v46 = vpop.f32.mrf.mxu0 }
 0x162   : > { %v664_v25 = vadd.f32 %v658_v46, %v542_v20 }
 0x163   : > { %v770_v45 = vpop.f32.mrf.mxu1  ;;  %v860_v53 = vpop.f32.mrf.mxu0 }
 0x164   : > { %v781_v16 = vadd.f32 %v770_v45, %v661_v8 }
 0x165   : > { %v772_v48 = vpop.f32.mrf.mxu1  ;;  %v862_v59 = vpop.f32.mrf.mxu0 }
 0x166   : > { %v871_v22 = vadd.f32 %v860_v53, %v781_v16  ;;  %v782_v23 = vadd.f32 %v772_v48, %v662_v17 }
 0x167   : > { %v776_v52 = vpop.f32.mrf.mxu1  ;;  %v866_v6 = vpop.f32.mrf.mxu0 }
 0x168   : > { %v783_v26 = vadd.f32 %v776_v52, %v663_v21  ;;  %v872_v27 = vadd.f32 %v862_v59, %v782_v23 }
 0x169   : > { %v778_v56 = vpop.f32.mrf.mxu1  ;;  %v868_v9 = vpop.f32.mrf.mxu0 }
 0x16a   : > { %v784_v4 = vadd.f32 %v778_v56, %v664_v25  ;;  %v873_v2 = vadd.f32 %v866_v6, %v783_v26 }
 0x16b   : > { %v980_v62 = vpop.f32.mrf.mxu1 }
 0x16c   : > { %v991_v13 = vadd.f32 %v980_v62, %v871_v22  ;;  %v874_v12 = vadd.f32 %v868_v9, %v784_v4 }
 0x16d   : > { %v982_v11 = vpop.f32.mrf.mxu1 }
 0x16e   : > { %v992_v29 = vadd.f32 %v982_v11, %v872_v27 }
 0x16f   : > { %v986_v18 = vpop.f32.mrf.mxu1 }
 0x170   : > { %v993_v33 = vadd.f32 %v986_v18, %v873_v2 }
 0x171   : > { %v988_v24 = vpop.f32.mrf.mxu1 }
 0x172   : > { %v994_v37 = vadd.f32 %v988_v24, %v874_v12 }
 0x173   : > { %v1102_v19 = vpop.f32.mrf.mxu0 }
 0x174   : > { %v1113_v30 = vadd.f32 %v1102_v19, %v991_v13 }
 0x175   : > { %v1104_v3 = vpop.f32.mrf.mxu0 }
 0x176   : > { %v1114_v34 = vadd.f32 %v1104_v3, %v992_v29 }
 0x177   : > { %v1108_v14 = vpop.f32.mrf.mxu0 }
 0x178   : > { %v1115_v38 = vadd.f32 %v1108_v14, %v993_v33 }
 0x179   : > { %v1110_v31 = vpop.f32.mrf.mxu0 }
 0x17a   : > { %v1116_v43 = vadd.f32 %v1110_v31, %v994_v37 }
 0x17b   : > { %v1222_v1 = vpop.f32.mrf.mxu1 }
 0x17c   : > { %v1233_v35 = vadd.f32 %v1222_v1, %v1113_v30 }
 0x17d   : > { %v1224_v28 = vpop.f32.mrf.mxu1 }
 0x17e   : > { %v1234_v39 = vadd.f32 %v1224_v28, %v1114_v34 }
 0x17f   : > { %v1228_v32 = vpop.f32.mrf.mxu1 }
 0x180   : > { %v1235_v0 = vadd.f32 %v1228_v32, %v1115_v38 }
 0x181   : > { %v1230_v41 = vpop.f32.mrf.mxu1 }
 0x182   : > { %v1236_v46 = vadd.f32 %v1230_v41, %v1116_v43 }
 0x183   : > { %v1343_v36 = vpop.f32.mrf.mxu0 }
 0x184   : > { %v1354_v40 = vadd.f32 %v1343_v36, %v1233_v35 }
 0x185   : > { %v1345_v42 = vpop.f32.mrf.mxu0 }
 0x186   : > { %1358 = vst [vmem:[%s271_s16] sm:$0xff] %v1354_v40  ;;  %v1355_v44 = vadd.f32 %v1345_v42, %v1234_v39 }
 0x187   : > { %v1349_v45 = vpop.f32.mrf.mxu0 }
 0x188   : > { %1359 = vst [vmem:[%s271_s16 + $0x8] sm:$0xff] %v1355_v44  ;;  %v1356_v47 = vadd.f32 %v1349_v45, %v1235_v0 }
 0x189   : > { %v1351_v48 = vpop.f32.mrf.mxu0 }
 0x18a   : > { %1360 = vst [vmem:[%s271_s16 + $0x10] sm:$0xff] %v1356_v47  ;;  %v1357_v49 = vadd.f32 %v1351_v48, %v1236_v46 }
 0x18c   : > { %1361 = vst [vmem:[%s271_s16 + $0x18] sm:$0xff] %v1357_v49 }
 0x18d PF: > { %s16_s21 = sadd.s32 1, %s1517_s21  }
 0x18e   : > { %p13_p4 = scmp.ge.s32.totalorder %s16_s21, 4  }
 0x190   :  { %15 = sbr.rel (!%p13_p4) target bundleno = 1 (0x1), region = 85 }

</bundles_post_ra>
